<compile_context>
chip_gen: v6e
topology: v6e:2x2x1
jax: 0.10.0
libtpu: 0.0.40
codegen_flags: <defaults>
</compile_context>

<pallas_src>
import jax
import jax.numpy as jnp
from jax.experimental import pallas as pl
from jax.experimental.pallas import tpu as pltpu

_MIB = 1024 * 1024
_VMEM_BUDGET = 20 * _MIB              # conservative; v7x has 32 MiB scoped / 64 MiB physical
_WEIGHT_RESIDENT_BUDGET = 16 * _MIB   # above this, switch to the K-tiled path


def _round_up(x, m):
    return ((x + m - 1) // m) * m


def _lane(d):
    return _round_up(d, 128)


def _sublane(dtype):
    # Rows pack along sublanes for sub-32-bit dtypes.
    itemsize = jnp.dtype(dtype).itemsize
    if itemsize >= 4:
        return 8
    if itemsize == 2:
        return 16
    return 32


# --------------------------------------------------------------------------
# Kernels
# --------------------------------------------------------------------------

def _mlp_kernel(x_ref, w1_ref, b1_ref, w2_ref, b2_ref, o_ref):
    """Fused matmul -> bias -> ReLU -> matmul -> bias; weights VMEM-resident."""
    h = jnp.dot(x_ref[...], w1_ref[...], preferred_element_type=jnp.float32)
    h = jnp.maximum(h + b1_ref[...], 0.0)                       # bias + ReLU (VPU)
    y = jnp.dot(h.astype(w2_ref.dtype), w2_ref[...],
                preferred_element_type=jnp.float32)
    o_ref[...] = (y + b2_ref[...]).astype(o_ref.dtype)


def _mlp_kernel_ktiled(x_ref, w1_ref, b1_ref, w2_ref, b2_ref, o_ref, acc_ref):
    """Same MLP with the first matmul's K (d_feature) axis tiled across grid axis 1."""
    k = pl.program_id(1)

    @pl.when(k == 0)
    def _():
        acc_ref[...] = jnp.zeros_like(acc_ref)

    acc_ref[...] += jnp.dot(x_ref[...], w1_ref[...],
                            preferred_element_type=jnp.float32)

    @pl.when(k == pl.num_programs(1) - 1)
    def _():
        h = jnp.maximum(acc_ref[...] + b1_ref[...], 0.0)
        y = jnp.dot(h.astype(w2_ref.dtype), w2_ref[...],
                    preferred_element_type=jnp.float32)
        o_ref[...] = (y + b2_ref[...]).astype(o_ref.dtype)


# --------------------------------------------------------------------------
# Wrapper
# --------------------------------------------------------------------------

def ln_classifier_forward(x, w1, b1, w2, b2, *, block_b=1024,
                          compute_dtype=None, force_k_tiling=False,
                          k_block=None):
    """x: [B, d_feature]; w1: [d_feature, d_hidden]; w2: [d_hidden, n_class].

    Returns [B, n_class].  Only w2/b2 are zero-padded on the class axis (for a
    lane-dense output store); x / w1 stay unpadded in HBM.  Set
    compute_dtype=jnp.bfloat16 on v5e/v6e to halve the dominant x HBM stream.
    """
    B, d_feature = x.shape
    d_hidden = w1.shape[1]
    n_class = w2.shape[1]
    b1 = jnp.reshape(b1, (1, d_hidden))
    b2 = jnp.reshape(b2, (1, n_class))

    if compute_dtype is not None and jnp.dtype(compute_dtype) != x.dtype:
        x, w1, b1, w2, b2 = (a.astype(compute_dtype) for a in (x, w1, b1, w2, b2))
    dtype = x.dtype
    itemsize = jnp.dtype(dtype).itemsize
    sl = _sublane(dtype)

    # Lane-dense output: pad only the (tiny) class axis of w2/b2; padded
    # columns are zero so the un-padded outputs are unchanged.
    n_cls_p = _lane(n_class)
    if n_cls_p != n_class:
        w2 = jnp.pad(w2, ((0, 0), (0, n_cls_p - n_class)))
        b2 = jnp.pad(b2, ((0, 0), (0, n_cls_p - n_class)))

    # ---- batch tile selection ----
    tb = min(block_b, _round_up(B, sl))
    tb = max(sl, _round_up(tb, sl))
    if B > sl:
        # Keep >= 2 grid tiles so the "parallel" axis can feed both v7x TCs.
        tb = min(tb, _round_up(pl.cdiv(B, 2), sl))

    w1_resident_bytes = _round_up(d_feature, sl) * _lane(d_hidden) * itemsize
    use_k_tiling = force_k_tiling or (w1_resident_bytes > _WEIGHT_RESIDENT_BUDGET)

    # Cost estimate with TRUE (unpadded) dims.
    flops = 2 * B * d_feature * d_hidden + 2 * B * d_hidden * n_class
    bytes_accessed = (B * d_feature + d_feature * d_hidden + d_hidden
                      + d_hidden * n_class + n_class + B * n_class) * itemsize
    cost = pl.CostEstimate(flops=flops, transcendentals=0,
                           bytes_accessed=bytes_accessed)

    if not use_k_tiling:
        # -------------------- resident-weight path --------------------
        def est(tb_):
            act = 2 * tb_ * (_lane(d_feature) + n_cls_p) * itemsize      # x/out double-buffered
            wts = (_round_up(d_feature, sl) * _lane(d_hidden) + _lane(d_hidden)
                   + _round_up(d_hidden, sl) * n_cls_p + n_cls_p) * itemsize  # resident (1 copy)
            tmp = tb_ * (_lane(d_hidden) + n_cls_p) * 4                  # f32 intermediates
            return act + wts + tmp

        while tb > sl and est(tb) > _VMEM_BUDGET:
            tb = max(sl, _round_up(tb // 2, sl))

        vmem_limit = int(min(max(est(tb) * 5 // 4, 16 * _MIB), 32 * _MIB))
        grid = (pl.cdiv(B, tb),)

        out_p = pl.pallas_call(
            _mlp_kernel,
            out_shape=jax.ShapeDtypeStruct((B, n_cls_p), dtype),
            grid_spec=pltpu.PrefetchScalarGridSpec(
                num_scalar_prefetch=0,
                grid=grid,
                in_specs=[
                    # x streamed per batch tile; last block dim == full array dim
                    # (no HBM padding; Mosaic pads lanes in VMEM only).
                    pl.BlockSpec((tb, d_feature), lambda i: (i, 0)),
                    pl.BlockSpec((d_feature, d_hidden), lambda i: (0, 0)),  # w1 resident
                    pl.BlockSpec((1, d_hidden), lambda i: (0, 0)),          # b1 resident
                    pl.BlockSpec((d_hidden, n_cls_p), lambda i: (0, 0)),    # w2 resident
                    pl.BlockSpec((1, n_cls_p), lambda i: (0, 0)),           # b2 resident
                ],
                out_specs=pl.BlockSpec((tb, n_cls_p), lambda i: (i, 0)),    # lane-dense store
            ),
            compiler_params=pltpu.CompilerParams(
                dimension_semantics=("parallel",),
                vmem_limit_bytes=vmem_limit,
            ),
            cost_estimate=cost,
        )(x, w1, b1, w2, b2)
    else:
        # -------------------- K-tiled fallback (large weights / v7x VMEM) ----
        tk = 512 if k_block is None else int(k_block)
        tk = max(128, _round_up(min(tk, _lane(d_feature)), 128))

        def est(tb_, tk_):
            stream = 2 * (tb_ * tk_ + tk_ * _lane(d_hidden)
                          + tb_ * n_cls_p) * itemsize                     # x, w1 chunk, out (x2 buf)
            res = (_lane(d_hidden) + _round_up(d_hidden, sl) * n_cls_p
                   + n_cls_p) * itemsize                                   # b1/w2/b2 resident
            acc = tb_ * _lane(d_hidden) * 4                                # f32 accumulator scratch
            tmp = tb_ * n_cls_p * 4
            return stream + res + acc + tmp

        while est(tb, tk) > _VMEM_BUDGET and (tb > sl or tk > 128):
            if tb > sl:
                tb = max(sl, _round_up(tb // 2, sl))
            else:
                tk = max(128, _round_up(tk // 2, 128))
        # TODO(synk): for extremely large d_hidden, also tile the hidden (N) axis
        # of w1 / the accumulator instead of only shrinking tb/tk.

        # Zero-pad the K axis of x and w1 to a whole number of K chunks so the
        # padded contributions are exactly zero (only used on this rare path).
        k_pad = _round_up(d_feature, tk)
        if k_pad != d_feature:
            x = jnp.pad(x, ((0, 0), (0, k_pad - d_feature)))
            w1 = jnp.pad(w1, ((0, k_pad - d_feature), (0, 0)))

        vmem_limit = int(min(max(est(tb, tk) * 5 // 4, 16 * _MIB), 32 * _MIB))
        grid = (pl.cdiv(B, tb), k_pad // tk)

        out_p = pl.pallas_call(
            _mlp_kernel_ktiled,
            out_shape=jax.ShapeDtypeStruct((B, n_cls_p), dtype),
            grid_spec=pltpu.PrefetchScalarGridSpec(
                num_scalar_prefetch=0,
                grid=grid,
                in_specs=[
                    pl.BlockSpec((tb, tk), lambda i, k: (i, k)),            # x chunk
                    pl.BlockSpec((tk, d_hidden), lambda i, k: (k, 0)),      # w1 chunk streamed
                    pl.BlockSpec((1, d_hidden), lambda i, k: (0, 0)),       # b1 resident
                    pl.BlockSpec((d_hidden, n_cls_p), lambda i, k: (0, 0)), # w2 resident
                    pl.BlockSpec((1, n_cls_p), lambda i, k: (0, 0)),        # b2 resident
                ],
                out_specs=pl.BlockSpec((tb, n_cls_p), lambda i, k: (i, 0)), # resident across k
                scratch_shapes=[pltpu.VMEM((tb, d_hidden), jnp.float32)],
            ),
            compiler_params=pltpu.CompilerParams(
                dimension_semantics=("parallel", "arbitrary"),
                vmem_limit_bytes=vmem_limit,
            ),
            cost_estimate=cost,
        )(x, w1, b1, w2, b2)

    return out_p[:, :n_class] if n_cls_p != n_class else out_p


def init_params(key, d_feature, n_class, dtype=jnp.float32):
    """Deterministic init matching nn.Linear's U(-1/sqrt(fan_in), 1/sqrt(fan_in))."""
    d_hidden = d_feature // 2
    k1, k2, k3, k4 = jax.random.split(key, 4)

    bound1 = 1.0 / jnp.sqrt(d_feature)
    w1 = jax.random.uniform(k1, (d_feature, d_hidden), dtype, -bound1, bound1)
    b1 = jax.random.uniform(k2, (1, d_hidden), dtype, -bound1, bound1)

    bound2 = 1.0 / jnp.sqrt(d_hidden)
    w2 = jax.random.uniform(k3, (d_hidden, n_class), dtype, -bound2, bound2)
    b2 = jax.random.uniform(k4, (1, n_class), dtype, -bound2, bound2)
    return w1, b1, w2, b2


def _reference(x, w1, b1, w2, b2):
    return jnp.maximum(x @ w1 + b1, 0.0) @ w2 + b2


if __name__ == "__main__":
    key = jax.random.PRNGKey(0)

    # 1) Small case matching the module spec shapes (d_feature=32, n_class=4).
    B, d_feature, n_class = 8, 32, 4
    kx, kp, key = jax.random.split(key, 3)
    x = jax.random.normal(kx, (B, d_feature), jnp.float32)
    w1, b1, w2, b2 = init_params(kp, d_feature, n_class)
    out = jax.block_until_ready(ln_classifier_forward(x, w1, b1, w2, b2))
    ref = _reference(x, w1, b1, w2, b2)
    assert out.shape == (B, n_class)
    assert jnp.allclose(out, ref, atol=1e-5, rtol=1e-5)

    # 2) Ragged batch tile + >= 2 grid tiles (B=300 -> tb=152, grid=(2,)).
    B2, d_feature2, n_class2 = 300, 96, 10
    kx2, kp2, key = jax.random.split(key, 3)
    x2 = jax.random.normal(kx2, (B2, d_feature2), jnp.float32)
    p2 = init_params(kp2, d_feature2, n_class2)
    out2 = jax.block_until_ready(ln_classifier_forward(x2, *p2))
    ref2 = _reference(x2, *p2)
    assert out2.shape == (B2, n_class2)
    assert jnp.allclose(out2, ref2, atol=1e-4, rtol=1e-4)

    # 3) bf16 operand path (halves the dominant x HBM stream on v5e/v6e).
    out3 = jax.block_until_ready(
        ln_classifier_forward(x2, *p2, compute_dtype=jnp.bfloat16))
    assert out3.shape == (B2, n_class2)
    assert jnp.allclose(out3.astype(jnp.float32), ref2, atol=5e-2, rtol=5e-2)

    # 4) Forced K-tiled fallback (large-weight / v7x VMEM path), including a
    #    d_feature that does not divide the K chunk (zero-padded K tail).
    B4, d_feature4, n_class4 = 70, 200, 6
    kx4, kp4 = jax.random.split(key)
    x4 = jax.random.normal(kx4, (B4, d_feature4), jnp.float32)
    p4 = init_params(kp4, d_feature4, n_class4)
    out4 = jax.block_until_ready(
        ln_classifier_forward(x4, *p4, force_k_tiling=True, k_block=128))
    ref4 = _reference(x4, *p4)
    assert out4.shape == (B4, n_class4)
    assert jnp.allclose(out4, ref4, atol=1e-3, rtol=1e-3)

    print("KERNEL_OK")
</pallas_src>

<mosaic_0001>
module attributes {stable_mosaic.version = 11 : i64} {
  func.func @_mlp_kernel(%arg0: i32, %arg1: memref<8x32xf32, #tpu.memory_space<vmem>>, %arg2: memref<32x16xf32, #tpu.memory_space<vmem>>, %arg3: memref<1x16xf32, #tpu.memory_space<vmem>>, %arg4: memref<16x128xf32, #tpu.memory_space<vmem>>, %arg5: memref<1x128xf32, #tpu.memory_space<vmem>>, %arg6: memref<8x128xf32, #tpu.memory_space<vmem>>) attributes {dimension_semantics = [#tpu.dimension_semantics<parallel>], iteration_bounds = array<i64: 1>, scalar_prefetch = 0 : i64, scratch_operands = 0 : i64, tpu.core_type = #tpu.core_type<tc>, window_params = [{transform_indices = @transform_0, window_bounds = array<i64: 8, 32>}, {pipeline_mode = #tpu.pipeline_mode<synchronous>, transform_indices = @transform_1, window_bounds = array<i64: 32, 16>}, {pipeline_mode = #tpu.pipeline_mode<synchronous>, transform_indices = @transform_2, window_bounds = array<i64: 1, 16>}, {pipeline_mode = #tpu.pipeline_mode<synchronous>, transform_indices = @transform_3, window_bounds = array<i64: 16, 128>}, {pipeline_mode = #tpu.pipeline_mode<synchronous>, transform_indices = @transform_4, window_bounds = array<i64: 1, 128>}, {transform_indices = @transform_5, window_bounds = array<i64: 8, 128>}]} {
    %c0 = arith.constant 0 : index
    %c0_0 = arith.constant 0 : index
    %0 = vector.load %arg1[%c0, %c0_0] : memref<8x32xf32, #tpu.memory_space<vmem>>, vector<8x32xf32>
    %c0_1 = arith.constant 0 : index
    %c0_2 = arith.constant 0 : index
    %1 = vector.load %arg2[%c0_1, %c0_2] : memref<32x16xf32, #tpu.memory_space<vmem>>, vector<32x16xf32>
    %cst = arith.constant dense<0.000000e+00> : vector<8x16xf32>
    %2 = tpu.matmul %0, %1, %cst {dimension_numbers = #tpu.dot_dimension_numbers<[1], [0], [0], [1], [0, 0, 1, 1], [], []>} : vector<8x32xf32>, vector<32x16xf32>, vector<8x16xf32> -> vector<8x16xf32>
    %c0_3 = arith.constant 0 : index
    %c0_4 = arith.constant 0 : index
    %3 = vector.load %arg3[%c0_3, %c0_4] : memref<1x16xf32, #tpu.memory_space<vmem>>, vector<1x16xf32>
    %4 = vector.broadcast %3 : vector<1x16xf32> to vector<8x16xf32>
    %5 = arith.addf %2, %4 : vector<8x16xf32>
    %cst_5 = arith.constant 0.000000e+00 : f32
    %6 = vector.broadcast %cst_5 : f32 to vector<8x16xf32>
    %7 = arith.maximumf %5, %6 : vector<8x16xf32>
    %c0_6 = arith.constant 0 : index
    %c0_7 = arith.constant 0 : index
    %8 = vector.load %arg4[%c0_6, %c0_7] : memref<16x128xf32, #tpu.memory_space<vmem>>, vector<16x128xf32>
    %cst_8 = arith.constant dense<0.000000e+00> : vector<8x128xf32>
    %9 = tpu.matmul %7, %8, %cst_8 {dimension_numbers = #tpu.dot_dimension_numbers<[1], [0], [0], [1], [0, 0, 1, 1], [], []>} : vector<8x16xf32>, vector<16x128xf32>, vector<8x128xf32> -> vector<8x128xf32>
    %c0_9 = arith.constant 0 : index
    %c0_10 = arith.constant 0 : index
    %10 = vector.load %arg5[%c0_9, %c0_10] : memref<1x128xf32, #tpu.memory_space<vmem>>, vector<1x128xf32>
    %11 = vector.broadcast %10 : vector<1x128xf32> to vector<8x128xf32>
    %12 = arith.addf %9, %11 : vector<8x128xf32>
    %c0_11 = arith.constant 0 : index
    %c0_12 = arith.constant 0 : index
    %13 = vector.load %arg6[%c0_11, %c0_12] : memref<8x128xf32, #tpu.memory_space<vmem>>, vector<8x128xf32>
    tpu.vector_store %arg6[%c0_11, %c0_12], %12 {strides = array<i32>} : memref<8x128xf32, #tpu.memory_space<vmem>>, vector<8x128xf32>,
    return
  }
  func.func @transform_0(%arg0: i32) -> (i32, i32) {
    %c0_i32 = arith.constant 0 : i32
    %c0_i32_0 = arith.constant 0 : i32
    return %arg0, %c0_i32 : i32, i32
  }
  func.func @transform_1(%arg0: i32) -> (i32, i32) {
    %c0_i32 = arith.constant 0 : i32
    %c0_i32_0 = arith.constant 0 : i32
    %c0_i32_1 = arith.constant 0 : i32
    return %c0_i32, %c0_i32_0 : i32, i32
  }
  func.func @transform_2(%arg0: i32) -> (i32, i32) {
    %c0_i32 = arith.constant 0 : i32
    %c0_i32_0 = arith.constant 0 : i32
    %c0_i32_1 = arith.constant 0 : i32
    return %c0_i32, %c0_i32_0 : i32, i32
  }
  func.func @transform_3(%arg0: i32) -> (i32, i32) {
    %c0_i32 = arith.constant 0 : i32
    %c0_i32_0 = arith.constant 0 : i32
    %c0_i32_1 = arith.constant 0 : i32
    return %c0_i32, %c0_i32_0 : i32, i32
  }
  func.func @transform_4(%arg0: i32) -> (i32, i32) {
    %c0_i32 = arith.constant 0 : i32
    %c0_i32_0 = arith.constant 0 : i32
    %c0_i32_1 = arith.constant 0 : i32
    return %c0_i32, %c0_i32_0 : i32, i32
  }
  func.func @transform_5(%arg0: i32) -> (i32, i32) {
    %c0_i32 = arith.constant 0 : i32
    %c0_i32_0 = arith.constant 0 : i32
    return %arg0, %c0_i32 : i32, i32
  }
}

</mosaic_0001>

<bundles_post_ra>
// kernel: tpu_custom_call.1
= control target key start
LH: loop header
LB: loop body
LE: loop exit
PB: predicated region body
PF: predicated region fallthrough
CT: control target
= control target key end

     0   :  { %v261_v1 = vmov 0.0   ;;  %vm262_vm0 = vmmov 0   ;;  %s324_s0 = inlined_call_operand.vmem [shape: f32[8,32], index: 0, kind: input, shape index: {}]   ;;  %s325_s1 = inlined_call_operand.vmem [shape: f32[32,16], index: 1, kind: input, shape index: {}]   ;;  %s326_s2 = inlined_call_operand.vmem [shape: f32[1,16], index: 2, kind: input, shape index: {}]   ;;  %s327_s3 = inlined_call_operand.vmem [shape: f32[16,128], index: 3, kind: input, shape index: {}]   ;;  %s328_s4 = inlined_call_operand.vmem [shape: f32[1,128], index: 4, kind: input, shape index: {}]   ;;  %s329_s5 = inlined_call_operand.hbm [shape: f32[8,128], index: 5, kind: output, shape index: {}]  }
   0x1   :  { %v25_v0 = vld [vmem:[%s325_s1 + $0x18] sm:$0xff]  ;;  %218 = vmatprep.subr.mxu0 %v261_v1  ;;  %v24_v2 = vld [vmem:[%s325_s1 + $0x10] sm:$0xff]  ;;  %226 = vmatprep.mubr.msk.f32.mxu0 %vm262_vm0, %v261_v1 }
   0x2   :  { %219 = vmatpush3.msra.mxu0 %v25_v0  ;;  %229 = vmatprep.subr.mxu1 %v261_v1 }
   0x3   :  { %10 = vsyncpa [#allocation3], 0  ;;  %220 = vmatprep.subr.mxu0 %v261_v1  ;;  %v23_v3 = vld [vmem:[%s325_s1 + $0x8] sm:$0xff]  ;;  %233 = vmatprep.mubr.msk.f32.mxu1 %vm262_vm0, %v261_v1  ;;  %v22_v4 = vld [vmem:[%s325_s1] sm:$0xff]  ;;  %vm33_vm1 = vcmask 261120   ;;  %vm117_vm2 = vcmask 130048  }
   0x4   :  { %221 = vmatpush3.msra.mxu0 %v24_v2  ;;  %v21_v5 = vld [vmem:[%s324_s0] sm:$0xff]  ;;  %v109_v6 = vld [vmem:[%s327_s3 + $0x8] sm:$0xff]  ;;  %s263_s9 = smov [#allocation2]  }
   0x5   :  { %222 = vmatprep.subr.mxu0 %v261_v1  ;;  %230 = vmatpush3.msra.mxu1 %v109_v6  ;;  %v108_v7 = vld [vmem:[%s327_s3] sm:$0xff]  ;;  %s198_s10 = sshll.u32 %s263_s9, 4  ;;  %s199_s10 = int_to_ptr.vmem [resolvable:$true] %s198_s10 }
   0x6   :  { %223 = vmatpush3.msra.mxu0 %v23_v3  ;;  %231 = vmatprep.subr.mxu1 %v261_v1  ;;  %v206_v8 = vld [vmem:[%s326_s2] ss:$0 sm:$0xff]  ;;  %s239_s3 = scalar_lea.vmem %s199_s10, 128  ;;  %p244_p1 = scmp.lt.s32.totalorder %s199_s10, %s199_s10 }
   0x7   :  { %224 = vmatprep.subr.mxu0 %v261_v1  ;;  %232 = vmatpush3.msra.mxu1 %v108_v7  ;;  %v208_v13 = vld [vmem:[%s328_s4] ss:$0 sm:$0xff]  ;;  %p240_p0 = scmp.ne.s32.totalorder %s199_s10, %s239_s3  ;;  %p245_p2 = scmp.lt.s32.totalorder %s239_s3, %s239_s3 }
   0x8   :  { %225 = vmatpush3.msra.mxu0 %v22_v4 }
   0x9   :  { %227 = vmatmul.mubr.msk.f32.vlgmr.msra.gmra.mxu0 %vm33_vm1, %v21_v5  ;;  %p246_p3 = por %p245_p2, %p244_p1 }
   0xb   :  { %p247_p4 = pnand %p246_p3, %p240_p0 }
  0xc9   :  { %v103_v9 = vpop.f32.mrf.mxu0 }
  0xca   :  { %v104_v10 = vadd.f32 %v206_v8, %v103_v9 }
  0xcb   :  { %v228_v11 = vpop.f32.mrf.mxu0 }
  0xcc   :  { %v107_v12 = vmax.f32 %v104_v10, 0.0 }
  0xce   :  { %234 = vmatmul.mubr.msk.f32.vlgmr.msra.gmra.mxu1 %vm117_vm2, %v107_v12 }
 0x18e   :  { %v187_v14 = vpop.f32.mrf.mxu1 }
 0x18f   :  { %v188_v15 = vadd.f32 %v208_v13, %v187_v14 }
 0x190   :  { %v235_v16 = vpop.f32.mrf.mxu1 }
 0x191   :  { %191 = vst [vmem:[#allocation2] sm:$0xff] %v188_v15 }
 0x192   :  { %250 = shalt.err (!%p247_p4)
}
 0x193   :  { %201 = dma.vmem_to_hbm [thread:$0]  %s199_s10, 128, %s329_s5, [#allocation3]  }
 0x194   :  { %259 = dma.done.wait [#allocation3], 128  }
 0x195   :  { %260 = vsyncadd [#allocation3], 4294967168 }
 0x196   :  { %205 = vsyncpa [#allocation3], 1 }

</bundles_post_ra>
